<compile_context>
chip_gen: v5e
topology: v5e:2x2
jax: 0.10.0
libtpu: 0.0.40
codegen_flags: <defaults>
</compile_context>

<pallas_src>
import functools

import jax
import jax.numpy as jnp
from jax.experimental import pallas as pl
from jax.experimental.pallas import tpu as pltpu


def _round_up(x, m):
    return (x + m - 1) // m * m


def _patch_embed_kernel(x_ref, w_ref, b_ref, o_ref):
    # x_ref: (TM, K) bf16 patch rows (streamed), w_ref: (K, N) bf16 (resident),
    # b_ref: (1, N) f32 (resident), o_ref: (TM, N) f32.
    acc = jnp.dot(x_ref[...], w_ref[...], preferred_element_type=jnp.float32)
    o_ref[...] = (acc + b_ref[...]).astype(o_ref.dtype)  # f32 epilogue (v5e-safe)


def patch_embed_matmul(x_patches, w, b, *, tile_m=1024):
    """x_patches: (M, K) bf16, w: (K, N) bf16, b: (1, N) f32 -> (M, N) f32.

    M-tiled GEMM with VMEM-resident weights/bias and full K per block.
    Double-buffered VMEM budget (bf16 x, f32 out, ViT-Base K=N=768, TM=1024):
      2*TM*K*2 + 2*TM*N*4 + K*N*2 + N*4  ~ 10 MiB  -> fits v5e/v6e/v7x.
    """
    M, K = x_patches.shape
    Kw, N = w.shape
    assert K == Kw and b.shape == (1, N)

    tm = min(tile_m, M)          # full-extent block when M is small
    grid = (pl.cdiv(M, tm),)     # partial last tile handled by masked writeback

    return pl.pallas_call(
        _patch_embed_kernel,
        out_shape=jax.ShapeDtypeStruct((M, N), jnp.float32),
        grid_spec=pl.GridSpec(
            grid=grid,
            in_specs=[
                pl.BlockSpec((tm, K), lambda i: (i, 0)),   # streamed patch rows
                pl.BlockSpec((K, N), lambda i: (0, 0)),    # resident weight
                pl.BlockSpec((1, N), lambda i: (0, 0)),    # resident bias
            ],
            out_specs=pl.BlockSpec((tm, N), lambda i: (i, 0)),
        ),
        compiler_params=pltpu.CompilerParams(
            # Rows are independent -> megacore sharding on v7x; harmless elsewhere.
            dimension_semantics=("parallel",),
            vmem_limit_bytes=48 * 1024 * 1024,  # headroom under v7x's 64 MiB
        ),
    )(x_patches, w, b)


@functools.partial(jax.jit, static_argnames=("patch_size",))
def patch_embedding_forward(im, weight, bias, *, patch_size):
    """im: (B, C, H, W) f32; weight: (D, C, ph, pw); bias: (D,) -> (B, P, D)."""
    B, C, H, W = im.shape
    ph, pw = patch_size
    gh, gw = H // ph, W // pw
    D = weight.shape[0]
    K = C * ph * pw

    # im2col in bf16: halves the bytes of the materialized transpose copy and
    # halves kernel HBM traffic (the GEMM is memory-bound at ViT K/N).
    x = im.astype(jnp.bfloat16)
    x = x.reshape(B, C, gh, ph, gw, pw)
    x = jnp.transpose(x, (0, 2, 4, 1, 3, 5))            # (B, gh, gw, C, ph, pw)
    x = x.reshape(B * gh * gw, K)

    w = weight.reshape(D, K).T.astype(jnp.bfloat16)     # (K, D)
    b = bias.reshape(1, D).astype(jnp.float32)

    # Lane-dense K (zero padding is numerically exact).
    k_pad = _round_up(K, 128)
    if k_pad != K:
        x = jnp.pad(x, ((0, 0), (0, k_pad - K)))
        w = jnp.pad(w, ((0, k_pad - K), (0, 0)))

    out = patch_embed_matmul(x, w, b)                   # (B*P, D) f32
    return out.reshape(B, gh * gw, D)


class PatchEmbedding:
    """JAX/Pallas equivalent of the PyTorch PatchEmbedding module."""

    def __init__(self, image_size, patch_size, embed_dim, channels, key):
        self.image_size = image_size
        self.patch_size = tuple(patch_size)
        self.grid_size = (image_size[0] // patch_size[0],
                          image_size[1] // patch_size[1])
        self.num_patches = self.grid_size[0] * self.grid_size[1]
        self.embed_dim = embed_dim
        self.channels = channels

        ph, pw = patch_size
        fan_in = channels * ph * pw
        bound = 1.0 / (fan_in ** 0.5)
        k_w, k_b = jax.random.split(key)
        # Matches nn.Conv2d default init: weight (D, C, ph, pw), bias (D,)
        self.weight = jax.random.uniform(
            k_w, (embed_dim, channels, ph, pw), jnp.float32, -bound, bound)
        self.bias = jax.random.uniform(
            k_b, (embed_dim,), jnp.float32, -bound, bound)

    def __call__(self, im):
        return patch_embedding_forward(
            im, self.weight, self.bias, patch_size=self.patch_size)


def _reference_conv(im, weight, bias, patch_size):
    """Pure-JAX f32 reference (matches nn.Conv2d with stride == kernel)."""
    y = jax.lax.conv_general_dilated(
        im, weight, window_strides=patch_size, padding="VALID",
        dimension_numbers=("NCHW", "OIHW", "NCHW"))
    y = y + bias[None, :, None, None]
    B, D, gh, gw = y.shape
    return jnp.transpose(y.reshape(B, D, gh * gw), (0, 2, 1))


def _reference_bf16_gemm(im, weight, bias, patch_size):
    """Reference with the kernel's numerics (bf16 inputs, f32 accumulate)."""
    B, C, H, W = im.shape
    ph, pw = patch_size
    gh, gw = H // ph, W // pw
    D = weight.shape[0]
    x = im.astype(jnp.bfloat16).reshape(B, C, gh, ph, gw, pw)
    x = jnp.transpose(x, (0, 2, 4, 1, 3, 5)).reshape(B * gh * gw, C * ph * pw)
    w = weight.reshape(D, C * ph * pw).T.astype(jnp.bfloat16)
    out = jnp.dot(x, w, preferred_element_type=jnp.float32) + bias[None, :]
    return out.reshape(B, gh * gw, D)


if __name__ == "__main__":
    key = jax.random.PRNGKey(0)
    k_param, k_x = jax.random.split(key)

    B, C, H, W = 2, 4, 16, 16
    patch = (4, 4)
    embed_dim = 32

    module = PatchEmbedding((H, W), patch, embed_dim, C, k_param)
    x = jax.random.normal(k_x, (B, C, H, W), jnp.float32)

    out = jax.block_until_ready(module(x))
    assert out.shape == (B, module.num_patches, embed_dim), out.shape

    # Tight check: same numerics (bf16 inputs, f32 accumulation) as an XLA GEMM.
    ref_bf16 = _reference_bf16_gemm(x, module.weight, module.bias, patch)
    assert jnp.allclose(out, ref_bf16, atol=1e-3, rtol=1e-3), \
        float(jnp.max(jnp.abs(out - ref_bf16)))

    # Semantic check vs the f32 conv module; loose tolerance for the bf16 cast.
    ref_f32 = _reference_conv(x, module.weight, module.bias, patch)
    assert jnp.allclose(out, ref_f32, atol=5e-2, rtol=5e-2), \
        float(jnp.max(jnp.abs(out - ref_f32)))

    print("KERNEL_OK")
</pallas_src>

<mosaic_0001>
module attributes {stable_mosaic.version = 11 : i64} {
  func.func @_patch_embed_kernel(%arg0: i32, %arg1: memref<32x128xbf16, #tpu.memory_space<vmem>>, %arg2: memref<128x32xbf16, #tpu.memory_space<vmem>>, %arg3: memref<1x32xf32, #tpu.memory_space<vmem>>, %arg4: memref<32x32xf32, #tpu.memory_space<vmem>>) attributes {dimension_semantics = [#tpu.dimension_semantics<parallel>], iteration_bounds = array<i64: 1>, scalar_prefetch = 0 : i64, scratch_operands = 0 : i64, tpu.core_type = #tpu.core_type<tc>, window_params = [{transform_indices = @transform_0, window_bounds = array<i64: 32, 128>}, {pipeline_mode = #tpu.pipeline_mode<synchronous>, transform_indices = @transform_1, window_bounds = array<i64: 128, 32>}, {pipeline_mode = #tpu.pipeline_mode<synchronous>, transform_indices = @transform_2, window_bounds = array<i64: 1, 32>}, {transform_indices = @transform_3, window_bounds = array<i64: 32, 32>}]} {
    %c0 = arith.constant 0 : index
    %c0_0 = arith.constant 0 : index
    %0 = vector.load %arg1[%c0, %c0_0] : memref<32x128xbf16, #tpu.memory_space<vmem>>, vector<32x128xbf16>
    %c0_1 = arith.constant 0 : index
    %c0_2 = arith.constant 0 : index
    %1 = vector.load %arg2[%c0_1, %c0_2] : memref<128x32xbf16, #tpu.memory_space<vmem>>, vector<128x32xbf16>
    %cst = arith.constant dense<0.000000e+00> : vector<32x32xf32>
    %2 = tpu.matmul %0, %1, %cst {dimension_numbers = #tpu.dot_dimension_numbers<[1], [0], [0], [1], [0, 0, 1, 1], [], []>} : vector<32x128xbf16>, vector<128x32xbf16>, vector<32x32xf32> -> vector<32x32xf32>
    %c0_3 = arith.constant 0 : index
    %c0_4 = arith.constant 0 : index
    %3 = vector.load %arg3[%c0_3, %c0_4] : memref<1x32xf32, #tpu.memory_space<vmem>>, vector<1x32xf32>
    %4 = vector.broadcast %3 : vector<1x32xf32> to vector<32x32xf32>
    %5 = arith.addf %2, %4 : vector<32x32xf32>
    %c0_5 = arith.constant 0 : index
    %c0_6 = arith.constant 0 : index
    %6 = vector.load %arg4[%c0_5, %c0_6] : memref<32x32xf32, #tpu.memory_space<vmem>>, vector<32x32xf32>
    tpu.vector_store %arg4[%c0_5, %c0_6], %5 {strides = array<i32>} : memref<32x32xf32, #tpu.memory_space<vmem>>, vector<32x32xf32>,
    return
  }
  func.func @transform_0(%arg0: i32) -> (i32, i32) {
    %c0_i32 = arith.constant 0 : i32
    %c0_i32_0 = arith.constant 0 : i32
    return %arg0, %c0_i32 : i32, i32
  }
  func.func @transform_1(%arg0: i32) -> (i32, i32) {
    %c0_i32 = arith.constant 0 : i32
    %c0_i32_0 = arith.constant 0 : i32
    %c0_i32_1 = arith.constant 0 : i32
    return %c0_i32, %c0_i32_0 : i32, i32
  }
  func.func @transform_2(%arg0: i32) -> (i32, i32) {
    %c0_i32 = arith.constant 0 : i32
    %c0_i32_0 = arith.constant 0 : i32
    %c0_i32_1 = arith.constant 0 : i32
    return %c0_i32, %c0_i32_0 : i32, i32
  }
  func.func @transform_3(%arg0: i32) -> (i32, i32) {
    %c0_i32 = arith.constant 0 : i32
    %c0_i32_0 = arith.constant 0 : i32
    return %arg0, %c0_i32 : i32, i32
  }
}

</mosaic_0001>

<bundles_post_ra>
// kernel: patch_embedding_forward.1
= control target key start
LH: loop header
LB: loop body
LE: loop exit
PB: predicated region body
PF: predicated region fallthrough
CT: control target
= control target key end

     0   :  { %s292_s0 = inlined_call_operand.vmem [shape: bf16[32,128], index: 0, kind: input, shape index: {}]   ;;  %s293_s1 = inlined_call_operand.vmem [shape: bf16[128,32], index: 1, kind: input, shape index: {}]   ;;  %s294_s2 = inlined_call_operand.vmem [shape: f32[1,32], index: 2, kind: input, shape index: {}]   ;;  %s295_s3 = inlined_call_operand.hbm [shape: f32[32,32], index: 3, kind: output, shape index: {}]  }
   0x1   :  { %v190_v0 = vld [vmem:[%s293_s1 + $0x38] sm:$0xff]  ;;  %v189_v1 = vld [vmem:[%s293_s1 + $0x30] sm:$0xff] }
   0x2   :  { %99 = vmatpush.bf16.msra.mxu0 %v190_v0  ;;  %191 = vmatpush.bf16.msra.mxu1 %v190_v0 }
   0x3   :  { %8 = vsyncpa [#allocation3], 0  ;;  %v188_v2 = vld [vmem:[%s293_s1 + $0x28] sm:$0xff]  ;;  %v187_v3 = vld [vmem:[%s293_s1 + $0x20] sm:$0xff]  ;;  %vm118_vm0 = vcmask 261120   ;;  %s129_s9 = sshll.u32 %s295_s3, 4  ;;  %s130_s9 = int_to_ptr.hbm [resolvable:$true] %s129_s9 }
   0x4   :  { %v186_v4 = vld [vmem:[%s293_s1 + $0x18] sm:$0xff]  ;;  %v185_v5 = vld [vmem:[%s293_s1 + $0x10] sm:$0xff]  ;;  %v184_v6 = vld [vmem:[%s293_s1 + $0x8] sm:$0xff]  ;;  %s231_s10 = smov 8  }
   0x5   :  { %v183_v7 = vld [vmem:[%s293_s1] sm:$0xff]  ;;  %v182_v9 = vld [vmem:[%s292_s0 + $0x8] sm:$0xff]  ;;  %s229_s1 = smov [#allocation2]  }
   0x6   :  { %100 = vmatpush.bf16.msra.mxu0 %v189_v1  ;;  %192 = vmatpush.bf16.msra.mxu1 %v189_v1  ;;  %v181_v8 = vld [vmem:[%s292_s0] sm:$0xff]  ;;  %s127_s7 = sshll.u32 %s229_s1, 4  ;;  %s128_s7 = int_to_ptr.vmem [resolvable:$true] %s127_s7 }
   0x7   :  { %v202_v10 = vld [vmem:[%s294_s2] ss:$0 sm:$0xff]  ;;  %s230_s2 = smov 128  }
   0xa   :  { %101 = vmatpush.bf16.msra.mxu0 %v188_v2  ;;  %193 = vmatpush.bf16.msra.mxu1 %v188_v2 }
   0xe   :  { %102 = vmatpush.bf16.msra.mxu0 %v187_v3  ;;  %194 = vmatpush.bf16.msra.mxu1 %v187_v3 }
  0x12   :  { %103 = vmatpush.bf16.msra.mxu0 %v186_v4  ;;  %195 = vmatpush.bf16.msra.mxu1 %v186_v4 }
  0x16   :  { %104 = vmatpush.bf16.msra.mxu0 %v185_v5  ;;  %196 = vmatpush.bf16.msra.mxu1 %v185_v5 }
  0x1a   :  { %105 = vmatpush.bf16.msra.mxu0 %v184_v6  ;;  %197 = vmatpush.bf16.msra.mxu1 %v184_v6 }
  0x1e   :  { %106 = vmatpush.bf16.msra.mxu0 %v183_v7  ;;  %198 = vmatpush.bf16.msra.mxu1 %v183_v7 }
  0x21   :  { %107 = vmatmul.bf16.vlgmr.msra.gmra.mxu0 %v181_v8  ;;  %112 = vmatmul.bf16.vlgmr.msra.gmra.mxu1 %v182_v9 }
  0x9e   :  { %v108_v11 = vpop.f32.mrf.mxu0  ;;  %v113_v12 = vpop.f32.mrf.mxu1 }
  0x9f   :  { %v109_v13 = vadd.f32 %v202_v10, %v108_v11  ;;  %v114_v14 = vadd.f32 %v202_v10, %v113_v12 }
  0xa1   :  { %119 = vst.msk [vmem:[#allocation2] sm:$0xff] %vm118_vm0, %v109_v13 }
  0xa2   :  { %121 = vst.msk [vmem:[#allocation2 + $0x10] sm:$0xff] %vm118_vm0, %v114_v14 }
  0xa6   :  { %v110_v15 = vpop.f32.mrf.mxu0  ;;  %v115_v16 = vpop.f32.mrf.mxu1 }
  0xa7   :  { %v111_v17 = vadd.f32 %v202_v10, %v110_v15  ;;  %v116_v18 = vadd.f32 %v202_v10, %v115_v16 }
  0xa9   :  { %120 = vst.msk [vmem:[#allocation2 + $0x8] sm:$0xff] %vm118_vm0, %v111_v17 }
  0xaa   :  { %122 = vst.msk [vmem:[#allocation2 + $0x18] sm:$0xff] %vm118_vm0, %v116_v18 }
  0xab   :  { %135 = dma.vmem_to_hbm [thread:$0]  %s128_s7, 512, %s130_s9, [#allocation3], %s230_s2, %s230_s2, %s231_s10  }
  0xac   :  { %227 = dma.done.wait [#allocation3], 512  }
  0xad   :  { %228 = vsyncadd [#allocation3], 4294966784 }
  0xae   :  { %140 = vsyncpa [#allocation3], 1 }

</bundles_post_ra>
